<compile_context>
chip_gen: v6e
topology: v6e:2x2x1
jax: 0.10.0
libtpu: 0.0.40
codegen_flags: <defaults>
</compile_context>

<pallas_src>
import jax
import jax.numpy as jnp
from jax.experimental import pallas as pl
from jax.experimental.pallas import tpu as pltpu


def _residual_pointwise_kernel(x_ref, w_ref, b_ref, o_ref):
    # x_ref: [G*C, T]   G folded batches x C channels on sublanes, spatial on lanes
    # w_ref: [G*C, G*C] block-diagonal kron(I_G, W), W = conv weight [C_out, C_in]
    # b_ref: [G*C, 1]   tiled conv bias (broadcasts over lanes)
    # o_ref: [G*C, T]
    x = x_ref[...].astype(jnp.float32)                       # cast once, reuse
    y = jnp.dot(w_ref[...], x, preferred_element_type=jnp.float32)
    y = y + b_ref[...]
    # ResidualAdd: out = fn(x) + x   (single store straight to o_ref: one vst)
    o_ref[...] = (y + x).astype(o_ref.dtype)


def _round_up(x, m):
    return (x + m - 1) // m * m


def _choose_group(B, C, *, max_rows=32):
    """Largest divisor G of B with G*C <= min(max_rows, 128) (single MXU pass)."""
    cap = min(max_rows, 128)
    best = 1
    for g in range(1, B + 1):
        if B % g == 0 and g * C <= cap:
            best = g
    return best


def residual_add_pointwise_conv(x_nchw, weight, bias, *,
                                vmem_block_bytes=4 * 1024 * 1024):
    """out = Conv2d_1x1(x) + x, NCHW in/out (PyTorch convention)."""
    B, C, H, W = x_nchw.shape
    assert weight.shape == (C, C, 1, 1), "inner fn is Conv2d(C, C, kernel_size=1)"
    assert bias.shape == (C,)

    HW = H * W
    itemsize = jnp.dtype(x_nchw.dtype).itemsize

    # Fold G batches into the sublane axis (fills the (8,128) f32 tile for C=4).
    G = _choose_group(B, C)
    rows = G * C
    padded_rows = _round_up(rows, 8)          # f32 sublane padding in VMEM/vregs

    # Largest lane-dense spatial tile under the per-buffer VMEM budget.
    max_tile = max(128, (vmem_block_bytes // (padded_rows * itemsize)) // 128 * 128)
    if HW <= max_tile:
        tile_hw = HW                          # single block == full extent (always legal)
        n_tiles = 1
    else:
        tile_hw = max_tile                    # multiple of 128; ragged tail masked by Pallas
        n_tiles = pl.cdiv(HW, tile_hw)

    # Free (contiguous) reshape: NCHW -> [B//G, G*C, H*W].
    x3d = x_nchw.reshape(B // G, rows, HW)

    # Block-diagonal weight so folded batches never mix channels across batches.
    w2d = weight.reshape(C, C).astype(jnp.float32)
    w_blk = jnp.kron(jnp.eye(G, dtype=jnp.float32), w2d)            # [rows, rows]
    b_blk = jnp.tile(bias.astype(jnp.float32), G).reshape(rows, 1)  # [rows, 1]

    grid = (B // G, n_tiles)

    out3d = pl.pallas_call(
        _residual_pointwise_kernel,
        out_shape=jax.ShapeDtypeStruct((B // G, rows, HW), x_nchw.dtype),
        grid_spec=pl.GridSpec(
            grid=grid,
            in_specs=[
                # batch-group dim squeezed; kernel sees [rows, tile_hw]
                pl.BlockSpec((None, rows, tile_hw), lambda g, j: (g, 0, j)),
                # weight / bias: constant block index -> resident in VMEM
                pl.BlockSpec((rows, rows), lambda g, j: (0, 0)),
                pl.BlockSpec((rows, 1), lambda g, j: (0, 0)),
            ],
            out_specs=pl.BlockSpec((None, rows, tile_hw), lambda g, j: (g, 0, j)),
        ),
        compiler_params=pltpu.CompilerParams(
            dimension_semantics=("parallel", "parallel")),
    )(x3d, w_blk, b_blk)

    return out3d.reshape(B, C, H, W)


def _reference(x, weight, bias):
    C = weight.shape[0]
    return (jnp.einsum("bchw,oc->bohw", x, weight.reshape(C, C))
            + bias.reshape(1, C, 1, 1) + x)


if __name__ == "__main__":
    key = jax.random.PRNGKey(0)
    kx, kw, kb, kx2, kx3 = jax.random.split(key, 5)

    B, C, H, W = 2, 4, 16, 16
    x = jax.random.normal(kx, (B, C, H, W), dtype=jnp.float32)
    # Deterministic synthetic parameters for the inner fn (Conv2d(C, C, 1)).
    weight = jax.random.normal(kw, (C, C, 1, 1), dtype=jnp.float32) * 0.1
    bias = jax.random.normal(kb, (C,), dtype=jnp.float32) * 0.1

    out = jax.block_until_ready(residual_add_pointwise_conv(x, weight, bias))
    ref = _reference(x, weight, bias)
    assert out.shape == (B, C, H, W)
    assert jnp.allclose(out, ref, atol=1e-5, rtol=1e-5)

    # Ragged spatial size, single-block path (block == full extent, no pad).
    x2 = jax.random.normal(kx2, (B, C, 7, 9), dtype=jnp.float32)
    out2 = jax.block_until_ready(residual_add_pointwise_conv(x2, weight, bias))
    ref2 = _reference(x2, weight, bias)
    assert out2.shape == (B, C, 7, 9)
    assert jnp.allclose(out2, ref2, atol=1e-5, rtol=1e-5)

    # Ragged multi-tile path: tiny VMEM budget forces tile_hw=128 over HW=272,
    # exercising the Pallas-masked boundary block (no wrapper pad/slice).
    x3 = jax.random.normal(kx3, (B, C, 16, 17), dtype=jnp.float32)
    out3 = jax.block_until_ready(
        residual_add_pointwise_conv(x3, weight, bias, vmem_block_bytes=4096))
    ref3 = _reference(x3, weight, bias)
    assert out3.shape == (B, C, 16, 17)
    assert jnp.allclose(out3, ref3, atol=1e-5, rtol=1e-5)

    print("KERNEL_OK")
</pallas_src>

<mosaic_0001>
module attributes {stable_mosaic.version = 11 : i64} {
  func.func @_residual_pointwise_kernel(%arg0: i32, %arg1: i32, %arg2: memref<1x8x256xf32, #tpu.memory_space<vmem>>, %arg3: memref<8x8xf32, #tpu.memory_space<vmem>>, %arg4: memref<8x1xf32, #tpu.memory_space<vmem>>, %arg5: memref<1x8x256xf32, #tpu.memory_space<vmem>>) attributes {dimension_semantics = [#tpu.dimension_semantics<parallel>, #tpu.dimension_semantics<parallel>], iteration_bounds = array<i64: 1, 1>, scalar_prefetch = 0 : i64, scratch_operands = 0 : i64, tpu.core_type = #tpu.core_type<tc>, window_params = [{transform_indices = @transform_0, window_bounds = array<i64: 1, 8, 256>}, {pipeline_mode = #tpu.pipeline_mode<synchronous>, transform_indices = @transform_1, window_bounds = array<i64: 8, 8>}, {pipeline_mode = #tpu.pipeline_mode<synchronous>, transform_indices = @transform_2, window_bounds = array<i64: 8, 1>}, {transform_indices = @transform_3, window_bounds = array<i64: 1, 8, 256>}]} {
    %c0 = arith.constant 0 : index
    %c0_0 = arith.constant 0 : index
    %c0_1 = arith.constant 0 : index
    %0 = vector.load %arg2[%c0, %c0_0, %c0_1] : memref<1x8x256xf32, #tpu.memory_space<vmem>>, vector<1x8x256xf32>
    %1 = vector.shape_cast %0 : vector<1x8x256xf32> to vector<8x256xf32>
    %c0_2 = arith.constant 0 : index
    %c0_3 = arith.constant 0 : index
    %2 = vector.load %arg3[%c0_2, %c0_3] : memref<8x8xf32, #tpu.memory_space<vmem>>, vector<8x8xf32>
    %cst = arith.constant dense<0.000000e+00> : vector<8x256xf32>
    %3 = tpu.matmul %2, %1, %cst {dimension_numbers = #tpu.dot_dimension_numbers<[1], [0], [0], [1], [0, 0, 1, 1], [], []>} : vector<8x8xf32>, vector<8x256xf32>, vector<8x256xf32> -> vector<8x256xf32>
    %c0_4 = arith.constant 0 : index
    %c0_5 = arith.constant 0 : index
    %4 = vector.load %arg4[%c0_4, %c0_5] : memref<8x1xf32, #tpu.memory_space<vmem>>, vector<8x1xf32>
    %5 = vector.broadcast %4 : vector<8x1xf32> to vector<8x256xf32>
    %6 = arith.addf %3, %5 : vector<8x256xf32>
    %7 = arith.addf %6, %1 : vector<8x256xf32>
    %c0_6 = arith.constant 0 : index
    %c0_7 = arith.constant 0 : index
    %c0_8 = arith.constant 0 : index
    %8 = vector.load %arg5[%c0_6, %c0_7, %c0_8] : memref<1x8x256xf32, #tpu.memory_space<vmem>>, vector<1x8x256xf32>
    %9 = vector.shape_cast %8 : vector<1x8x256xf32> to vector<8x256xf32>
    %10 = vector.shape_cast %7 : vector<8x256xf32> to vector<1x8x256xf32>
    tpu.vector_store %arg5[%c0_6, %c0_7, %c0_8], %10 {strides = array<i32>} : memref<1x8x256xf32, #tpu.memory_space<vmem>>, vector<1x8x256xf32>,
    return
  }
  func.func @transform_0(%arg0: i32, %arg1: i32) -> (i32, i32, i32) {
    %c0_i32 = arith.constant 0 : i32
    %c0_i32_0 = arith.constant 0 : i32
    return %arg0, %c0_i32, %arg1 : i32, i32, i32
  }
  func.func @transform_1(%arg0: i32, %arg1: i32) -> (i32, i32) {
    %c0_i32 = arith.constant 0 : i32
    %c0_i32_0 = arith.constant 0 : i32
    %c0_i32_1 = arith.constant 0 : i32
    return %c0_i32, %c0_i32_0 : i32, i32
  }
  func.func @transform_2(%arg0: i32, %arg1: i32) -> (i32, i32) {
    %c0_i32 = arith.constant 0 : i32
    %c0_i32_0 = arith.constant 0 : i32
    %c0_i32_1 = arith.constant 0 : i32
    return %c0_i32, %c0_i32_0 : i32, i32
  }
  func.func @transform_3(%arg0: i32, %arg1: i32) -> (i32, i32, i32) {
    %c0_i32 = arith.constant 0 : i32
    %c0_i32_0 = arith.constant 0 : i32
    return %arg0, %c0_i32, %arg1 : i32, i32, i32
  }
}

</mosaic_0001>

<bundles_post_ra>
// kernel: tpu_custom_call.1
= control target key start
LH: loop header
LB: loop body
LE: loop exit
PB: predicated region body
PF: predicated region fallthrough
CT: control target
= control target key end

     0   :  { %8 = vsyncpa [#allocation3], 0  ;;  %s216_s0 = inlined_call_operand.hbm [shape: f32[1,8,256], index: 0, kind: input, shape index: {}]   ;;  %s217_s1 = inlined_call_operand.vmem [shape: f32[8,8], index: 1, kind: input, shape index: {}]   ;;  %s218_s2 = inlined_call_operand.vmem [shape: f32[8,1], index: 2, kind: input, shape index: {}]   ;;  %s219_s3 = inlined_call_operand.hbm [shape: f32[1,8,256], index: 3, kind: output, shape index: {}]  }
   0x1   :  { %9 = vsyncpa [#allocation4], 0  ;;  %s180_s12 = smov [#allocation2]  }
   0x2   :  { %s16_s13 = sshll.u32 %s180_s12, 4  ;;  %s17_s13 = int_to_ptr.vmem [resolvable:$true] %s16_s13 }
   0x3   :  { %s144_s14 = scalar_lea.vmem %s17_s13, 256  ;;  %p149_p1 = scmp.lt.s32.totalorder %s17_s13, %s17_s13 }
   0x4   :  { %p145_p0 = scmp.ne.s32.totalorder %s17_s13, %s144_s14  ;;  %p150_p2 = scmp.lt.s32.totalorder %s144_s14, %s144_s14 }
   0x6   :  { %p151_p3 = por %p150_p2, %p149_p1 }
   0x8   :  { %p152_p4 = pnand %p151_p3, %p145_p0 }
   0xa   :  { %155 = shalt.err (!%p152_p4)
}
   0xb   :  { %19 = dma.hbm_to_vmem [thread:$0]  %s216_s0, 256, %s17_s13, [#allocation3]  }
   0xc   :  { %176 = dma.done.wait [#allocation3], 256  }
   0xd   :  { %177 = vsyncadd [#allocation3], 4294967040  ;;  %v181_v0 = vmov 0.0   ;;  %v182_v1 = vmov 0   ;;  %v28_v2 = vld [vmem:[#allocation2 + $0x8] sm:$0xff]  ;;  %v27_v3 = vld [vmem:[#allocation2] sm:$0xff] }
   0xe   :  { %104 = vmatprep.mubr.f32.mxu0 %v181_v0  ;;  %135 = vset.pattern.permute.xlu0 %v182_v1  ;;  %v29_v4 = vld [vmem:[%s217_s1] sm:$0xff]  ;;  %vm36_vm0 = vcmask 64512   ;;  %s183_s0 = smov [#allocation5]  }
   0xf   :  { %70 = vmatprep.subr.mxu0 %v28_v2  ;;  %v30_v5 = vld [vmem:[%s218_s2] sm:$0xff]  ;;  %s121_s21 = sshll.u32 %s183_s0, 4  ;;  %s122_s21 = int_to_ptr.vmem [resolvable:$true] %s121_s21 }
  0x10   :  { %71 = vmatpush1.msra.mxu0 %v27_v3  ;;  %33 = vperm.xlu0 %135, %v30_v5   ;;  %s156_s1 = scalar_lea.vmem %s122_s21, 256  ;;  %p161_p6 = scmp.lt.s32.totalorder %s122_s21, %s122_s21 }
  0x11   :  { %130 = vmatmul.mubr.msk.f32.vlgmr.msra.gmra.mxu0 %vm36_vm0, %v29_v4  ;;  %p157_p5 = scmp.ne.s32.totalorder %s122_s21, %s156_s1  ;;  %p162_p7 = scmp.lt.s32.totalorder %s156_s1, %s156_s1 }
  0x13   :  { %p163_p8 = por %p162_p7, %p161_p6 }
  0x15   :  { %p164_p9 = pnand %p163_p8, %p157_p5 }
  0x8b   :  { %v34_v6 = vpop.permute.xlu0 %33 }
  0xd1   :  { %v106_v7 = vpop.f32.mrf.mxu0 }
  0xd2   :  { %v107_v8 = vadd.f32 %v106_v7, %v34_v6 }
  0xd3   :  { %v108_v9 = vpop.f32.mrf.mxu0 }
  0xd4   :  { %v111_v10 = vadd.f32 %v107_v8, %v27_v3  ;;  %v109_v11 = vadd.f32 %v108_v9, %v34_v6 }
  0xd6   :  { %113 = vst [vmem:[#allocation5] sm:$0xff] %v111_v10  ;;  %v112_v12 = vadd.f32 %v109_v11, %v28_v2 }
  0xd8   :  { %114 = vst [vmem:[#allocation5 + $0x8] sm:$0xff] %v112_v12 }
  0xd9   :  { %167 = shalt.err (!%p164_p9)
}
  0xda   :  { %124 = dma.vmem_to_hbm [thread:$0]  %s122_s21, 256, %s219_s3, [#allocation4]  }
  0xdb   :  { %178 = dma.done.wait [#allocation4], 256  }
  0xdc   :  { %179 = vsyncadd [#allocation4], 4294967040 }
  0xdd   :  { %128 = vsyncpa [#allocation3], 1 }
  0xde   :  { %129 = vsyncpa [#allocation4], 1 }

</bundles_post_ra>
